<compile_context>
chip_gen: v6e
topology: v6e:2x2x1
jax: 0.10.0
libtpu: 0.0.40
codegen_flags: <defaults>
</compile_context>

<pallas_src>
import jax
import jax.numpy as jnp
from jax import lax
from jax.experimental import pallas as pl
from jax.experimental.pallas import tpu as pltpu

REGRESSOR_HIDDEN_SIZE = 88

_LANE = 128
_SUBLANE_F32 = 8
_MAX_TILE_B = 16 * 1024                      # review: 8K-16K rows for small D
_VMEM_FOOTPRINT_BUDGET = 36 * 1024 * 1024    # target total compute footprint
_VMEM_LIMIT_FLOOR = 32 * 1024 * 1024
_VMEM_LIMIT_CAP = 48 * 1024 * 1024           # safe on v7x (64 MiB physical)


def _round_up(x, m):
    return ((x + m - 1) // m) * m


def _cdiv(a, b):
    return -(-a // b)


def _vmem_footprint(tile_b, D, Hp, itemsize):
    """Estimated VMEM bytes for one grid step (incl. double-buffering)."""
    sub = 32 // itemsize                                   # sublane packing
    x = 2 * tile_b * _round_up(D, _LANE) * itemsize        # streamed x, 2 bufs
    h = 2 * tile_b * Hp * 4                                # f32 h (+ temp)
    out = 2 * _SUBLANE_F32 * tile_b * 4                    # (1,tile_b) f32, 2 bufs
    w1 = 2 * _round_up(D, sub) * Hp * itemsize             # pinned, still 2 bufs
    small = 3 * 2 * _SUBLANE_F32 * _LANE * 4               # nb1, w2, b2
    return x + h + out + w1 + small


def _choose_tile(B, D, itemsize, Hp):
    """Pick (tile_b, num_tiles): biggest tile in budget, fewest (even) tiles."""
    per_row = (2 * _round_up(D, _LANE) * itemsize          # x, double-buffered
               + 2 * Hp * 4                                # f32 h (+ temp)
               + 2 * _SUBLANE_F32 * 4)                     # out, double-buffered
    fixed = _vmem_footprint(0, D, Hp, itemsize)
    avail = max(0, _VMEM_FOOTPRINT_BUDGET - fixed)
    max_rows = max(_LANE, min(_MAX_TILE_B, (avail // per_row) // _LANE * _LANE))

    k = max(1, _cdiv(B, max_rows))
    if B > _LANE:
        k = max(k, 2)            # >=2 tiles so both v7x TCs get work
    if k > 1 and k % 2:
        k += 1                   # even tile count for the two cores
    tile_b = max(_LANE, _round_up(_cdiv(B, k), _LANE))
    while tile_b > max_rows:     # safety net: shrink tile, keep k even
        k += 2
        tile_b = max(_LANE, _round_up(_cdiv(B, k), _LANE))
    return tile_b, k


def _stage2_kernel(x_ref, w1_ref, nb1_ref, w2_ref, b2_ref, o_ref):
    # fc1 on the MXU: (tile_b, D) @ (D, Hp), bf16 operands, f32 accumulation.
    h = jnp.dot(x_ref[...], w1_ref[...], preferred_element_type=jnp.float32)

    # Bias-folded ReLU: relu(h + b1) == max(h, -b1) + b1; the "+ b1" term is
    # folded into b2 wrapper-side (b2' = b2 + w2.T @ b1), so the epilogue is a
    # single VALU max per element (nb1 = -b1, kept in f32).
    r = jnp.maximum(h, nb1_ref[...])

    # TODO(synk): dropout is identity in eval mode; training-mode stochastic
    # masking (pltpu.prng_random_bits) intentionally not implemented.

    # fc2: contract the hidden (lane) dim of (1, Hp) against (tile_b, Hp) so
    # the result is produced lane-dense as (1, tile_b). Padded hidden lanes are
    # zero in r and in w2, so they contribute nothing.
    # TODO(synk): confirm via bundle dump that no vxpose of r is inserted; if
    # one appears, switch to pl.dot(w2_ref[...], r, trans_b=True).
    out_row = lax.dot_general(
        w2_ref[...], r,
        dimension_numbers=(((1,), (1,)), ((), ())),
        preferred_element_type=jnp.float32,
    )                                                      # (1, tile_b)
    o_ref[0] = (out_row + b2_ref[...]).astype(o_ref.dtype)


def stage2_regressor(x, w1, b1, w2, b2, *, input_dtype=jnp.bfloat16):
    """x: (B, D). w1: (D, H), b1: (H,), w2: (H, 1), b2: (1,). Returns (B, 1) f32."""
    B, D = x.shape
    H = w1.shape[1]
    Hp = _round_up(H, _LANE)                               # 88 -> 128
    itemsize = jnp.dtype(input_dtype).itemsize

    tile_b, num_tiles = _choose_tile(B, D, itemsize, Hp)
    Bp = num_tiles * tile_b

    # ---- wrapper-side packing / padding (layout plumbing only) -------------
    xp = x if Bp == B else jnp.pad(x, ((0, Bp - B), (0, 0)))
    xp = xp.astype(input_dtype)                                     # bf16 stream
    w1p = jnp.pad(w1, ((0, 0), (0, Hp - H))).astype(input_dtype)    # (D, Hp)
    nb1p = jnp.pad(-b1, (0, Hp - H)).reshape(1, Hp).astype(jnp.float32)
    w2p = jnp.pad(w2.reshape(-1), (0, Hp - H)).reshape(1, Hp).astype(jnp.float32)
    # fold w2.T @ b1 into the output bias (kept in f32)
    b2p = (b2.reshape(()) + jnp.dot(w2.reshape(-1), b1)).reshape(1, 1)
    b2p = b2p.astype(jnp.float32)

    footprint = _vmem_footprint(tile_b, D, Hp, itemsize)
    vmem_limit = int(min(_VMEM_LIMIT_CAP,
                         max(_VMEM_LIMIT_FLOOR, footprint + (8 << 20))))

    out = pl.pallas_call(
        _stage2_kernel,
        out_shape=jax.ShapeDtypeStruct((num_tiles, 1, tile_b), jnp.float32),
        grid_spec=pltpu.PrefetchScalarGridSpec(
            num_scalar_prefetch=0,
            grid=(num_tiles,),
            in_specs=[
                pl.BlockSpec((tile_b, D), lambda i: (i, 0)),   # x: streamed
                pl.BlockSpec((D, Hp), lambda i: (0, 0)),       # w1: pinned
                pl.BlockSpec((1, Hp), lambda i: (0, 0)),       # -b1: pinned
                pl.BlockSpec((1, Hp), lambda i: (0, 0)),       # w2 row: pinned
                pl.BlockSpec((1, 1), lambda i: (0, 0)),        # b2': pinned
            ],
            out_specs=pl.BlockSpec((1, 1, tile_b), lambda i: (i, 0, 0)),
        ),
        compiler_params=pltpu.CompilerParams(
            dimension_semantics=("parallel",),
            vmem_limit_bytes=vmem_limit,
        ),
    )(xp, w1p, nb1p, w2p, b2p)

    return out.reshape(Bp, 1)[:B]


def init_params(key, input_size, hidden_size=REGRESSOR_HIDDEN_SIZE):
    """Deterministic synthetic init (PyTorch-Linear-like uniform bounds)."""
    k1, k2, k3, k4 = jax.random.split(key, 4)
    lim1 = 1.0 / jnp.sqrt(input_size)
    lim2 = 1.0 / jnp.sqrt(hidden_size)
    # Stored as (in, out) == transpose of torch's (out, in) weight layout.
    w1 = jax.random.uniform(k1, (input_size, hidden_size), jnp.float32, -lim1, lim1)
    b1 = jax.random.uniform(k2, (hidden_size,), jnp.float32, -lim1, lim1)
    w2 = jax.random.uniform(k3, (hidden_size, 1), jnp.float32, -lim2, lim2)
    b2 = jax.random.uniform(k4, (1,), jnp.float32, -lim2, lim2)
    return w1, b1, w2, b2


def _reference(x, w1, b1, w2, b2):
    # Plain-JAX reference with the same bf16 rounding of x / w1 the kernel's
    # fc1 applies (f32 accumulation in both); eval dropout == identity.
    xb = x.astype(jnp.bfloat16).astype(jnp.float32)
    w1b = w1.astype(jnp.bfloat16).astype(jnp.float32)
    return jnp.maximum(xb @ w1b + b1[None, :], 0.0) @ w2 + b2[None, :]


if __name__ == "__main__":
    key = jax.random.PRNGKey(0)

    # (batch, input_size): small case + a multi-tile case (exercises k>=2 path).
    for batch, input_size in [(8, 32), (384, 56)]:
        key, kx, kp = jax.random.split(key, 3)
        x = jax.random.normal(kx, (batch, input_size), dtype=jnp.float32)
        w1, b1, w2, b2 = init_params(kp, input_size)

        out = stage2_regressor(x, w1, b1, w2, b2)
        out = jax.block_until_ready(out)
        assert out.shape == (batch, 1)

        ref = _reference(x, w1, b1, w2, b2)
        assert jnp.allclose(out, ref, atol=1e-4, rtol=1e-3), (
            batch, input_size, float(jnp.max(jnp.abs(out - ref))))

    print("KERNEL_OK")
</pallas_src>

<mosaic_0001>
module attributes {stable_mosaic.version = 11 : i64} {
  func.func @_stage2_kernel(%arg0: i32, %arg1: memref<128x32xbf16, #tpu.memory_space<vmem>>, %arg2: memref<32x128xbf16, #tpu.memory_space<vmem>>, %arg3: memref<1x128xf32, #tpu.memory_space<vmem>>, %arg4: memref<1x128xf32, #tpu.memory_space<vmem>>, %arg5: memref<1x1xf32, #tpu.memory_space<vmem>>, %arg6: memref<1x1x128xf32, #tpu.memory_space<vmem>>) attributes {dimension_semantics = [#tpu.dimension_semantics<parallel>], iteration_bounds = array<i64: 1>, scalar_prefetch = 0 : i64, scratch_operands = 0 : i64, tpu.core_type = #tpu.core_type<tc>, window_params = [{transform_indices = @transform_0, window_bounds = array<i64: 128, 32>}, {pipeline_mode = #tpu.pipeline_mode<synchronous>, transform_indices = @transform_1, window_bounds = array<i64: 32, 128>}, {pipeline_mode = #tpu.pipeline_mode<synchronous>, transform_indices = @transform_2, window_bounds = array<i64: 1, 128>}, {pipeline_mode = #tpu.pipeline_mode<synchronous>, transform_indices = @transform_3, window_bounds = array<i64: 1, 128>}, {pipeline_mode = #tpu.pipeline_mode<synchronous>, transform_indices = @transform_4, window_bounds = array<i64: 1, 1>}, {transform_indices = @transform_5, window_bounds = array<i64: 1, 1, 128>}]} {
    %c0 = arith.constant 0 : index
    %c0_0 = arith.constant 0 : index
    %0 = vector.load %arg1[%c0, %c0_0] : memref<128x32xbf16, #tpu.memory_space<vmem>>, vector<128x32xbf16>
    %c0_1 = arith.constant 0 : index
    %c0_2 = arith.constant 0 : index
    %1 = vector.load %arg2[%c0_1, %c0_2] : memref<32x128xbf16, #tpu.memory_space<vmem>>, vector<32x128xbf16>
    %cst = arith.constant dense<0.000000e+00> : vector<128x128xf32>
    %2 = tpu.matmul %0, %1, %cst {dimension_numbers = #tpu.dot_dimension_numbers<[1], [0], [0], [1], [0, 0, 1, 1], [], []>} : vector<128x32xbf16>, vector<32x128xbf16>, vector<128x128xf32> -> vector<128x128xf32>
    %c0_3 = arith.constant 0 : index
    %c0_4 = arith.constant 0 : index
    %3 = vector.load %arg3[%c0_3, %c0_4] : memref<1x128xf32, #tpu.memory_space<vmem>>, vector<1x128xf32>
    %4 = vector.broadcast %3 : vector<1x128xf32> to vector<128x128xf32>
    %5 = arith.maximumf %2, %4 : vector<128x128xf32>
    %c0_5 = arith.constant 0 : index
    %c0_6 = arith.constant 0 : index
    %6 = vector.load %arg4[%c0_5, %c0_6] : memref<1x128xf32, #tpu.memory_space<vmem>>, vector<1x128xf32>
    %cst_7 = arith.constant dense<0.000000e+00> : vector<1x128xf32>
    %7 = tpu.matmul %6, %5, %cst_7 {dimension_numbers = #tpu.dot_dimension_numbers<[1], [1], [0], [0], [0, 0, 1, 0], [], []>} : vector<1x128xf32>, vector<128x128xf32>, vector<1x128xf32> -> vector<1x128xf32>
    %c0_8 = arith.constant 0 : index
    %c0_9 = arith.constant 0 : index
    %8 = vector.load %arg5[%c0_8, %c0_9] : memref<1x1xf32, #tpu.memory_space<vmem>>, vector<1x1xf32>
    %9 = vector.broadcast %8 : vector<1x1xf32> to vector<1x128xf32>
    %10 = arith.addf %7, %9 : vector<1x128xf32>
    %c0_10 = arith.constant 0 : index
    %c0_11 = arith.constant 0 : index
    %c0_12 = arith.constant 0 : index
    %11 = vector.load %arg6[%c0_10, %c0_11, %c0_12] : memref<1x1x128xf32, #tpu.memory_space<vmem>>, vector<1x1x128xf32>
    %12 = vector.shape_cast %11 : vector<1x1x128xf32> to vector<1x128xf32>
    %13 = vector.shape_cast %10 : vector<1x128xf32> to vector<1x1x128xf32>
    tpu.vector_store %arg6[%c0_10, %c0_11, %c0_12], %13 {strides = array<i32>} : memref<1x1x128xf32, #tpu.memory_space<vmem>>, vector<1x1x128xf32>,
    return
  }
  func.func @transform_0(%arg0: i32) -> (i32, i32) {
    %c0_i32 = arith.constant 0 : i32
    %c0_i32_0 = arith.constant 0 : i32
    return %arg0, %c0_i32 : i32, i32
  }
  func.func @transform_1(%arg0: i32) -> (i32, i32) {
    %c0_i32 = arith.constant 0 : i32
    %c0_i32_0 = arith.constant 0 : i32
    %c0_i32_1 = arith.constant 0 : i32
    return %c0_i32, %c0_i32_0 : i32, i32
  }
  func.func @transform_2(%arg0: i32) -> (i32, i32) {
    %c0_i32 = arith.constant 0 : i32
    %c0_i32_0 = arith.constant 0 : i32
    %c0_i32_1 = arith.constant 0 : i32
    return %c0_i32, %c0_i32_0 : i32, i32
  }
  func.func @transform_3(%arg0: i32) -> (i32, i32) {
    %c0_i32 = arith.constant 0 : i32
    %c0_i32_0 = arith.constant 0 : i32
    %c0_i32_1 = arith.constant 0 : i32
    return %c0_i32, %c0_i32_0 : i32, i32
  }
  func.func @transform_4(%arg0: i32) -> (i32, i32) {
    %c0_i32 = arith.constant 0 : i32
    %c0_i32_0 = arith.constant 0 : i32
    %c0_i32_1 = arith.constant 0 : i32
    return %c0_i32, %c0_i32_0 : i32, i32
  }
  func.func @transform_5(%arg0: i32) -> (i32, i32, i32) {
    %c0_i32 = arith.constant 0 : i32
    %c0_i32_0 = arith.constant 0 : i32
    %c0_i32_1 = arith.constant 0 : i32
    return %arg0, %c0_i32, %c0_i32_0 : i32, i32, i32
  }
}

</mosaic_0001>

<bundles_post_ra>
// kernel: tpu_custom_call.1
= control target key start
LH: loop header
LB: loop body
LE: loop exit
PB: predicated region body
PF: predicated region fallthrough
CT: control target
= control target key end

     0   :  { %s576_s0 = inlined_call_operand.vmem [shape: bf16[128,32], index: 0, kind: input, shape index: {}]   ;;  %s577_s1 = inlined_call_operand.vmem [shape: bf16[32,128], index: 1, kind: input, shape index: {}]   ;;  %s578_s2 = inlined_call_operand.vmem [shape: f32[1,128], index: 2, kind: input, shape index: {}]   ;;  %s579_s3 = inlined_call_operand.vmem [shape: f32[1,128], index: 3, kind: input, shape index: {}]   ;;  %s580_s4 = inlined_call_operand.<no memory space> [shape: f32[1,1], index: 4, kind: input, shape index: {}]   ;;  %s581_s5 = inlined_call_operand.hbm [shape: f32[1,1,128], index: 5, kind: output, shape index: {}]  }
   0x1   :  { %v10_v0 = vstv %s580_s4 }
   0x2   :  { %11 = vst [vmem:[#allocation2] sm:$0x1] %v10_v0 }
   0x3   :  { %v443_v1 = vld [vmem:[%s577_s1 + $0x8] sm:$0xff]   ;;  %v444_v2 = vld [vmem:[%s577_s1] sm:$0xff]   ;;  %vm96_vm0 = vcmask 261120   ;;  %v447_v5 = vld [vmem:[%s576_s0 + $0x10] sm:$0xff]  }
   0x4   :  { %383 = vmatprep.subr.bf16.mxu0 %v443_v1  ;;  %v445_v3 = vld [vmem:[%s576_s0] sm:$0xff]   ;;  %v446_v4 = vld [vmem:[%s576_s0 + $0x8] sm:$0xff]  }
   0x5   :  { %384 = vmatpush3.bf16.msra.mxu0 %v443_v1  ;;  %387 = vmatprep.mubr.msk.bf16.mxu0 %vm96_vm0, %v445_v3 }
   0x6   :  { %385 = vmatprep.subr.bf16.mxu0 %v444_v2 }
   0x9   :  { %386 = vmatpush3.bf16.msra.mxu0 %v444_v2 }
   0xc   :  { %388 = vmatmul.mubr.msk.bf16.vlgmr.msra.gmra.mxu0 %vm96_vm0, %v446_v4 }
   0xd   :  { %12 = vsyncpa [#allocation4], 0  ;;  %391 = vmatprep.mubr.msk.bf16.mxu0 %vm96_vm0, %v447_v5  ;;  %v448_v6 = vld [vmem:[%s576_s0 + $0x18] sm:$0xff]   ;;  %v449_v7 = vld [vmem:[%s576_s0 + $0x20] sm:$0xff]   ;;  %v475_v11 = vmov 0.0   ;;  %vm476_vm1 = vmmov 0   ;;  %v248_v48 = vlaneseq }
   0xe   :  { %v450_v8 = vld [vmem:[%s576_s0 + $0x28] sm:$0xff]   ;;  %v451_v9 = vld [vmem:[%s576_s0 + $0x30] sm:$0xff]   ;;  %v452_v10 = vld [vmem:[%s576_s0 + $0x38] sm:$0xff]   ;;  %403 = vmatprep.subr.mxu1 %v475_v11  ;;  %435 = vmatprep.mubr.msk.f32.mxu1 %vm476_vm1, %v475_v11  ;;  %v477_v13 = vmov 0   ;;  %s478_s15 = smov [#allocation3]  }
   0xf   :  { %v242_v12 = vld [vmem:[#allocation2] sm:$0x1]  ;;  %442 = vset.pattern.permute.xlu0 %v477_v13  ;;  %v249_v49 = vshrl.u32 %v248_v48, 7  ;;  %s329_s16 = sshll.u32 %s478_s15, 4  ;;  %s330_s16 = int_to_ptr.vmem [resolvable:$true] %s329_s16 }
  0x10   :  { %245 = vperm.xlu0 %442, %v242_v12   ;;  %v355_v28 = vld [vmem:[%s578_s2] ss:$0 sm:$0xff]  ;;  %s453_s17 = scalar_lea.vmem %s330_s16, 16  ;;  %s457_s18 = scalar_lea.vmem %s330_s16, 32 }
  0x11   :  { %v241_v47 = vld [vmem:[%s579_s3] sm:$0x1]  ;;  %v250_v50 = vsub.s32 0, %v249_v49  ;;  %p454_p0 = scmp.ne.s32.totalorder %s330_s16, %s453_s17  ;;  %p458_p1 = scmp.lt.s32.totalorder %s330_s16, %s330_s16 }
  0x12   :  { %p459_p2 = scmp.lt.s32.totalorder %s457_s18, %s453_s17 }
  0x14   :  { %392 = vmatmul.mubr.msk.bf16.gmra.mxu0 %vm96_vm0, %v448_v6  ;;  %p460_p3 = por %p459_p2, %p458_p1 }
  0x15   :  { %395 = vmatprep.mubr.msk.bf16.mxu0 %vm96_vm0, %v449_v7 }
  0x16   :  { %p461_p4 = pnand %p460_p3, %p454_p0 }
  0x1c   :  { %396 = vmatmul.mubr.msk.bf16.gmra.mxu0 %vm96_vm0, %v450_v8 }
  0x1d   :  { %399 = vmatprep.mubr.msk.bf16.mxu0 %vm96_vm0, %v451_v9 }
  0x24   :  { %400 = vmatmul.mubr.msk.bf16.gmra.mxu0 %vm96_vm0, %v452_v10 }
  0x8b   :  { %v246_v51 = vpop.permute.xlu0 %245 }
  0x8c   :  { %v251_v52 = vrot.slane %v246_v51, %v250_v50 }
  0xcc   :  { %v389_v14 = vpop.f32.mrf.mxu0 }
  0xcd   :  { %v227_v44 = vmax.f32 %v389_v14, %v355_v28 }
  0xce   :  { %v155_v15 = vpop.f32.mrf.mxu0 }
  0xcf   :  { %v225_v46 = vmax.f32 %v155_v15, %v355_v28 }
  0xd0   :  { %v390_v16 = vpop.f32.mrf.mxu0 }
  0xd1   :  { %v228_v43 = vmax.f32 %v390_v16, %v355_v28 }
  0xd2   :  { %v158_v17 = vpop.f32.mrf.mxu0 }
  0xd3   :  { %v226_v45 = vmax.f32 %v158_v17, %v355_v28 }
  0xd4   :  { %v393_v18 = vpop.f32.mrf.mxu0 }
  0xd5   :  { %v231_v40 = vmax.f32 %v393_v18, %v355_v28 }
  0xd6   :  { %v171_v19 = vpop.f32.mrf.mxu0 }
  0xd7   :  { %v229_v42 = vmax.f32 %v171_v19, %v355_v28 }
  0xd8   :  { %v394_v20 = vpop.f32.mrf.mxu0 }
  0xd9   :  { %v232_v39 = vmax.f32 %v394_v20, %v355_v28 }
  0xda   :  { %v174_v21 = vpop.f32.mrf.mxu0 }
  0xdb   :  { %v230_v41 = vmax.f32 %v174_v21, %v355_v28 }
  0xdc   :  { %v397_v22 = vpop.f32.mrf.mxu0 }
  0xdd   :  { %v235_v36 = vmax.f32 %v397_v22, %v355_v28 }
  0xde   :  { %v187_v23 = vpop.f32.mrf.mxu0 }
  0xdf   :  { %v233_v38 = vmax.f32 %v187_v23, %v355_v28 }
  0xe0   :  { %v398_v24 = vpop.f32.mrf.mxu0 }
  0xe1   :  { %v236_v35 = vmax.f32 %v398_v24, %v355_v28 }
  0xe2   :  { %v190_v25 = vpop.f32.mrf.mxu0 }
  0xe3   :  { %v234_v37 = vmax.f32 %v190_v25, %v355_v28 }
  0xe4   :  { %v401_v26 = vpop.f32.mrf.mxu0 }
  0xe5   :  { %v239_v31 = vmax.f32 %v401_v26, %v355_v28 }
  0xe6   :  { %v203_v27 = vpop.f32.mrf.mxu0 }
  0xe7   :  { %v237_v34 = vmax.f32 %v203_v27, %v355_v28 }
  0xe8   :  { %v402_v29 = vpop.f32.mrf.mxu0 }
  0xe9   :  { %v240_v30 = vmax.f32 %v402_v29, %v355_v28 }
  0xea   :  { %v206_v32 = vpop.f32.mrf.mxu0 }
  0xeb   :  { %404 = vmatpush3.xpose.msra.mxu1 %v240_v30  ;;  %v238_v33 = vmax.f32 %v206_v32, %v355_v28 }
  0xec   :  { %405 = vmatprep.subr.mxu1 %v475_v11 }
  0xef   :  { %406 = vmatpush3.xpose.msra.mxu1 %v239_v31 }
  0xf0   :  { %407 = vmatprep.subr.mxu1 %v475_v11 }
  0xf3   :  { %408 = vmatpush3.xpose.msra.mxu1 %v238_v33 }
  0xf4   :  { %409 = vmatprep.subr.mxu1 %v475_v11 }
  0xf7   :  { %410 = vmatpush3.xpose.msra.mxu1 %v237_v34 }
  0xf8   :  { %411 = vmatprep.subr.mxu1 %v475_v11 }
  0xfb   :  { %412 = vmatpush3.xpose.msra.mxu1 %v236_v35 }
  0xfc   :  { %413 = vmatprep.subr.mxu1 %v475_v11 }
  0xff   :  { %414 = vmatpush3.xpose.msra.mxu1 %v235_v36 }
 0x100   :  { %415 = vmatprep.subr.mxu1 %v475_v11 }
 0x103   :  { %416 = vmatpush3.xpose.msra.mxu1 %v234_v37 }
 0x104   :  { %417 = vmatprep.subr.mxu1 %v475_v11 }
 0x107   :  { %418 = vmatpush3.xpose.msra.mxu1 %v233_v38 }
 0x108   :  { %419 = vmatprep.subr.mxu1 %v475_v11 }
 0x10b   :  { %420 = vmatpush3.xpose.msra.mxu1 %v232_v39 }
 0x10c   :  { %421 = vmatprep.subr.mxu1 %v475_v11 }
 0x10f   :  { %422 = vmatpush3.xpose.msra.mxu1 %v231_v40 }
 0x110   :  { %423 = vmatprep.subr.mxu1 %v475_v11 }
 0x113   :  { %424 = vmatpush3.xpose.msra.mxu1 %v230_v41 }
 0x114   :  { %425 = vmatprep.subr.mxu1 %v475_v11 }
 0x117   :  { %426 = vmatpush3.xpose.msra.mxu1 %v229_v42 }
 0x118   :  { %427 = vmatprep.subr.mxu1 %v475_v11 }
 0x11b   :  { %428 = vmatpush3.xpose.msra.mxu1 %v228_v43 }
 0x11c   :  { %429 = vmatprep.subr.mxu1 %v475_v11 }
 0x11f   :  { %430 = vmatpush3.xpose.msra.mxu1 %v227_v44 }
 0x120   :  { %431 = vmatprep.subr.mxu1 %v475_v11 }
 0x123   :  { %432 = vmatpush3.xpose.msra.mxu1 %v226_v45 }
 0x124   :  { %433 = vmatprep.subr.mxu1 %v475_v11 }
 0x127   :  { %434 = vmatpush3.xpose.msra.mxu1 %v225_v46 }
 0x12a   :  { %436 = vmatmul.mubr.f32.vlgmr.msra.gmra.mxu1 %v241_v47 }
 0x1ea   :  { %v318_v53 = vpop.f32.mrf.mxu1 }
 0x1eb   :  { %v319_v54 = vadd.f32 %v318_v53, %v251_v52 }
 0x1ec   :  { %v437_v55 = vpop.f32.mrf.mxu1 }
 0x1ed   :  { %322 = vst [vmem:[#allocation3] sm:$0x1] %v319_v54 }
 0x1ee   :  { %464 = shalt.err (!%p461_p4)
}
 0x1ef   :  { %332 = dma.vmem_to_hbm [thread:$0]  %s330_s16, 16, %s581_s5, [#allocation4]  }
 0x1f0   :  { %473 = dma.done.wait [#allocation4], 16  }
 0x1f1   :  { %474 = vsyncadd [#allocation4], 4294967280 }
 0x1f2   :  { %336 = vsyncpa [#allocation4], 1 }

</bundles_post_ra>
